<compile_context>
chip_gen: v7x
topology: tpu7x:2x2x1
jax: 0.10.0
libtpu: 0.0.40
codegen_flags: <defaults>
</compile_context>

<pallas_src>
import functools

import jax
import jax.numpy as jnp
from jax.experimental import pallas as pl
from jax.experimental.pallas import tpu as pltpu

_DEFAULT_TILE_B = 2048   # rows per grid step (sweepable); multiple of the 8-row sublane


def _leaky_relu(x, negative_slope=0.01):
    # matches torch.nn.functional.leaky_relu default slope
    return jnp.where(x > 0, x, negative_slope * x)


def _mlp_kernel(x_ref, w1_ref, b1_ref, w2_ref, b2_ref, w3_ref, b3_ref, o_ref,
                *, actor: bool, compute_dtype):
    # Matmuls run on the MXU in `compute_dtype` (f32 or bf16) with f32
    # accumulation; all elementwise math stays in f32.
    x = x_ref[...].astype(compute_dtype)

    h1 = jnp.dot(x, w1_ref[...], preferred_element_type=jnp.float32) + b1_ref[...]
    h1 = _leaky_relu(h1)

    h2 = jnp.dot(h1.astype(compute_dtype), w2_ref[...],
                 preferred_element_type=jnp.float32) + b2_ref[...]
    h2 = _leaky_relu(h2)

    h3 = jnp.dot(h2.astype(compute_dtype), w3_ref[...],
                 preferred_element_type=jnp.float32) + b3_ref[...]

    if actor:
        # sigmoid via exp + approximate reciprocal: both map to the EUP slot.
        out = pl.reciprocal(1.0 + jnp.exp(-h3), approx=True)
    else:
        out = h3

    o_ref[...] = out.astype(o_ref.dtype)


def prepare_params(params, compute_dtype=jnp.float32):
    """One-time parameter prep (outside the per-call path).

    Casts weight matrices to the MXU compute dtype (f32 or bf16); biases stay
    f32 since bias-add / activations run in f32 inside the kernel.
    """
    return dict(
        w1=params["w1"].astype(compute_dtype),
        w2=params["w2"].astype(compute_dtype),
        w3=params["w3"].astype(compute_dtype),
        b1=params["b1"].astype(jnp.float32),
        b2=params["b2"].astype(jnp.float32),
        b3=params["b3"].astype(jnp.float32),
    )


@functools.partial(jax.jit, static_argnames=("actor", "tile_b"))
def network_forward(x, params, *, actor: bool = False, tile_b=None):
    """Run the Network forward pass as a single batch-tiled Pallas kernel.

    x:      (B, input_dim) float array
    params: dict from prepare_params(): w1 (in,h1), b1 (1,h1), w2 (h1,h2),
            b2 (1,h2), w3 (h2,out), b3 (1,out)
    """
    B, in_dim = x.shape
    hid_in = params["w1"].shape[1]
    hid_out = params["w2"].shape[1]
    out_dim = params["w3"].shape[1]
    compute_dtype = params["w1"].dtype

    # Batch tile: big enough to amortize per-step overhead; never larger than B
    # (a block dim equal to the full array dim is always legal, so no batch
    # padding is needed).  If a custom tile_b < B is given it must be a
    # multiple of 8 (sublane).  Ragged last blocks are clipped by Pallas.
    if tile_b is None:
        tile_b = min(_DEFAULT_TILE_B, B)
    else:
        tile_b = min(tile_b, B)
    grid = (pl.cdiv(B, tile_b),)

    def batch_map(i):       # x / output: walk the batch axis
        return (i, 0)

    def resident_map(i):    # weights / biases: same block every step -> VMEM-resident
        return (0, 0)

    in_specs = [
        pl.BlockSpec((tile_b, in_dim), batch_map),
        pl.BlockSpec((in_dim, hid_in), resident_map),
        pl.BlockSpec((1, hid_in), resident_map),
        pl.BlockSpec((hid_in, hid_out), resident_map),
        pl.BlockSpec((1, hid_out), resident_map),
        pl.BlockSpec((hid_out, out_dim), resident_map),
        pl.BlockSpec((1, out_dim), resident_map),
    ]
    out_spec = pl.BlockSpec((tile_b, out_dim), batch_map)

    # Advisory cost hint for XLA's scheduler (real flops / bytes, no padding).
    w_bytes = (in_dim * hid_in + hid_in * hid_out + hid_out * out_dim) * compute_dtype.itemsize
    b_bytes = (hid_in + hid_out + out_dim) * 4
    cost = pl.CostEstimate(
        flops=int(2 * B * (in_dim * hid_in + hid_in * hid_out + hid_out * out_dim)),
        transcendentals=int(2 * B * out_dim) if actor else 0,
        bytes_accessed=int(B * in_dim * x.dtype.itemsize + B * out_dim * 4
                           + w_bytes + b_bytes),
    )

    kernel = functools.partial(_mlp_kernel, actor=actor, compute_dtype=compute_dtype)

    out = pl.pallas_call(
        kernel,
        grid=grid,
        in_specs=in_specs,
        out_specs=out_spec,
        out_shape=jax.ShapeDtypeStruct((B, out_dim), jnp.float32),
        compiler_params=pltpu.CompilerParams(
            dimension_semantics=("parallel",),
        ),
        cost_estimate=cost,
    )(x, params["w1"], params["b1"], params["w2"], params["b2"],
      params["w3"], params["b3"])

    return out


def init_params(key, input_dim, hidden_in_dim, hidden_out_dim, output_dim):
    """Deterministic init mimicking nn.Linear default (U[-1/sqrt(fan_in), +])."""
    ks = jax.random.split(key, 6)

    def linear(kw, kb, fan_in, fan_out):
        lim = 1.0 / jnp.sqrt(jnp.float32(fan_in))
        w = jax.random.uniform(kw, (fan_in, fan_out), jnp.float32, -lim, lim)
        b = jax.random.uniform(kb, (1, fan_out), jnp.float32, -lim, lim)
        return w, b

    w1, b1 = linear(ks[0], ks[1], input_dim, hidden_in_dim)
    w2, b2 = linear(ks[2], ks[3], hidden_in_dim, hidden_out_dim)
    w3, b3 = linear(ks[4], ks[5], hidden_out_dim, output_dim)
    return dict(w1=w1, b1=b1, w2=w2, b2=b2, w3=w3, b3=b3)


def _reference_forward(x, p, actor):
    h1 = _leaky_relu(x @ p["w1"] + p["b1"])
    h2 = _leaky_relu(h1 @ p["w2"] + p["b2"])
    h3 = h2 @ p["w3"] + p["b3"]
    return jax.nn.sigmoid(h3) if actor else h3


if __name__ == "__main__":
    key = jax.random.PRNGKey(0)
    kx, kx2, kp = jax.random.split(key, 3)

    input_dim, hidden_in_dim, hidden_out_dim, output_dim = 24, 64, 64, 4
    raw = init_params(kp, input_dim, hidden_in_dim, hidden_out_dim, output_dim)
    params_f32 = prepare_params(raw)                       # f32 MXU path
    params_bf16 = prepare_params(raw, jnp.bfloat16)        # bf16 MXU path

    # Small batch (module-consistent shape), f32 path.
    B = 8
    x = jax.random.normal(kx, (B, input_dim), jnp.float32)

    out_critic = jax.block_until_ready(network_forward(x, params_f32, actor=False))
    ref_critic = _reference_forward(x, raw, actor=False)
    out_actor = jax.block_until_ready(network_forward(x, params_f32, actor=True))
    ref_actor = _reference_forward(x, raw, actor=True)

    assert out_critic.shape == (B, output_dim)
    assert out_actor.shape == (B, output_dim)
    assert jnp.allclose(out_critic, ref_critic, atol=1e-5, rtol=1e-5)
    assert jnp.allclose(out_actor, ref_actor, atol=2e-3, rtol=2e-3)

    # Larger batch: default (single tile, no padding) and an explicit small tile
    # that exercises the multi-step "parallel" batch grid.
    B2 = 640
    x2 = jax.random.normal(kx2, (B2, input_dim), jnp.float32)
    ref2 = _reference_forward(x2, raw, actor=False)

    out2 = jax.block_until_ready(network_forward(x2, params_f32, actor=False))
    out2_tiled = jax.block_until_ready(
        network_forward(x2, params_f32, actor=False, tile_b=128))
    assert out2.shape == (B2, output_dim)
    assert jnp.allclose(out2, ref2, atol=1e-4, rtol=1e-4)
    assert jnp.allclose(out2_tiled, ref2, atol=1e-4, rtol=1e-4)

    # bf16 MXU path (looser tolerance; elementwise math stays f32).
    ref2_actor = _reference_forward(x2, raw, actor=True)
    out2_bf16 = jax.block_until_ready(network_forward(x2, params_bf16, actor=True))
    assert out2_bf16.shape == (B2, output_dim)
    assert jnp.allclose(out2_bf16, ref2_actor, atol=5e-2, rtol=5e-2)

    print("KERNEL_OK")
</pallas_src>

<mosaic_0001>
module attributes {stable_mosaic.version = 11 : i64} {
  func.func @_mlp_kernel(%arg0: i32, %arg1: memref<8x24xf32, #tpu.memory_space<vmem>>, %arg2: memref<24x64xf32, #tpu.memory_space<vmem>>, %arg3: memref<1x64xf32, #tpu.memory_space<vmem>>, %arg4: memref<64x64xf32, #tpu.memory_space<vmem>>, %arg5: memref<1x64xf32, #tpu.memory_space<vmem>>, %arg6: memref<64x4xf32, #tpu.memory_space<vmem>>, %arg7: memref<1x4xf32, #tpu.memory_space<vmem>>, %arg8: memref<8x4xf32, #tpu.memory_space<vmem>>) attributes {dimension_semantics = [#tpu.dimension_semantics<parallel>], iteration_bounds = array<i64: 1>, scalar_prefetch = 0 : i64, scratch_operands = 0 : i64, tpu.core_type = #tpu.core_type<tc>, window_params = [{transform_indices = @transform_0, window_bounds = array<i64: 8, 24>}, {pipeline_mode = #tpu.pipeline_mode<synchronous>, transform_indices = @transform_1, window_bounds = array<i64: 24, 64>}, {pipeline_mode = #tpu.pipeline_mode<synchronous>, transform_indices = @transform_2, window_bounds = array<i64: 1, 64>}, {pipeline_mode = #tpu.pipeline_mode<synchronous>, transform_indices = @transform_3, window_bounds = array<i64: 64, 64>}, {pipeline_mode = #tpu.pipeline_mode<synchronous>, transform_indices = @transform_4, window_bounds = array<i64: 1, 64>}, {pipeline_mode = #tpu.pipeline_mode<synchronous>, transform_indices = @transform_5, window_bounds = array<i64: 64, 4>}, {pipeline_mode = #tpu.pipeline_mode<synchronous>, transform_indices = @transform_6, window_bounds = array<i64: 1, 4>}, {transform_indices = @transform_7, window_bounds = array<i64: 8, 4>}]} {
    %c0 = arith.constant 0 : index
    %c0_0 = arith.constant 0 : index
    %0 = vector.load %arg1[%c0, %c0_0] : memref<8x24xf32, #tpu.memory_space<vmem>>, vector<8x24xf32>
    %c0_1 = arith.constant 0 : index
    %c0_2 = arith.constant 0 : index
    %1 = vector.load %arg2[%c0_1, %c0_2] : memref<24x64xf32, #tpu.memory_space<vmem>>, vector<24x64xf32>
    %cst = arith.constant dense<0.000000e+00> : vector<8x64xf32>
    %2 = tpu.matmul %0, %1, %cst {dimension_numbers = #tpu.dot_dimension_numbers<[1], [0], [0], [1], [0, 0, 1, 1], [], []>} : vector<8x24xf32>, vector<24x64xf32>, vector<8x64xf32> -> vector<8x64xf32>
    %c0_3 = arith.constant 0 : index
    %c0_4 = arith.constant 0 : index
    %3 = vector.load %arg3[%c0_3, %c0_4] : memref<1x64xf32, #tpu.memory_space<vmem>>, vector<1x64xf32>
    %4 = vector.broadcast %3 : vector<1x64xf32> to vector<8x64xf32>
    %5 = arith.addf %2, %4 : vector<8x64xf32>
    %cst_5 = arith.constant 0.000000e+00 : f32
    %6 = vector.broadcast %cst_5 : f32 to vector<8x64xf32>
    %7 = arith.cmpf ogt, %5, %6 : vector<8x64xf32>
    %cst_6 = arith.constant 0.00999999977 : f32
    %8 = vector.broadcast %cst_6 : f32 to vector<8x64xf32>
    %9 = arith.mulf %8, %5 : vector<8x64xf32>
    %10 = arith.select %7, %5, %9 : vector<8x64xi1>, vector<8x64xf32>
    %c0_7 = arith.constant 0 : index
    %c0_8 = arith.constant 0 : index
    %11 = vector.load %arg4[%c0_7, %c0_8] : memref<64x64xf32, #tpu.memory_space<vmem>>, vector<64x64xf32>
    %cst_9 = arith.constant dense<0.000000e+00> : vector<8x64xf32>
    %12 = tpu.matmul %10, %11, %cst_9 {dimension_numbers = #tpu.dot_dimension_numbers<[1], [0], [0], [1], [0, 0, 1, 1], [], []>} : vector<8x64xf32>, vector<64x64xf32>, vector<8x64xf32> -> vector<8x64xf32>
    %c0_10 = arith.constant 0 : index
    %c0_11 = arith.constant 0 : index
    %13 = vector.load %arg5[%c0_10, %c0_11] : memref<1x64xf32, #tpu.memory_space<vmem>>, vector<1x64xf32>
    %14 = vector.broadcast %13 : vector<1x64xf32> to vector<8x64xf32>
    %15 = arith.addf %12, %14 : vector<8x64xf32>
    %cst_12 = arith.constant 0.000000e+00 : f32
    %16 = vector.broadcast %cst_12 : f32 to vector<8x64xf32>
    %17 = arith.cmpf ogt, %15, %16 : vector<8x64xf32>
    %cst_13 = arith.constant 0.00999999977 : f32
    %18 = vector.broadcast %cst_13 : f32 to vector<8x64xf32>
    %19 = arith.mulf %18, %15 : vector<8x64xf32>
    %20 = arith.select %17, %15, %19 : vector<8x64xi1>, vector<8x64xf32>
    %c0_14 = arith.constant 0 : index
    %c0_15 = arith.constant 0 : index
    %21 = vector.load %arg6[%c0_14, %c0_15] : memref<64x4xf32, #tpu.memory_space<vmem>>, vector<64x4xf32>
    %cst_16 = arith.constant dense<0.000000e+00> : vector<8x4xf32>
    %22 = tpu.matmul %20, %21, %cst_16 {dimension_numbers = #tpu.dot_dimension_numbers<[1], [0], [0], [1], [0, 0, 1, 1], [], []>} : vector<8x64xf32>, vector<64x4xf32>, vector<8x4xf32> -> vector<8x4xf32>
    %c0_17 = arith.constant 0 : index
    %c0_18 = arith.constant 0 : index
    %23 = vector.load %arg7[%c0_17, %c0_18] : memref<1x4xf32, #tpu.memory_space<vmem>>, vector<1x4xf32>
    %24 = vector.broadcast %23 : vector<1x4xf32> to vector<8x4xf32>
    %25 = arith.addf %22, %24 : vector<8x4xf32>
    %c0_19 = arith.constant 0 : index
    %c0_20 = arith.constant 0 : index
    %26 = vector.load %arg8[%c0_19, %c0_20] : memref<8x4xf32, #tpu.memory_space<vmem>>, vector<8x4xf32>
    tpu.vector_store %arg8[%c0_19, %c0_20], %25 {strides = array<i32>} : memref<8x4xf32, #tpu.memory_space<vmem>>, vector<8x4xf32>,
    return
  }
  func.func @transform_0(%arg0: i32) -> (i32, i32) {
    %c0_i32 = arith.constant 0 : i32
    %c0_i32_0 = arith.constant 0 : i32
    return %arg0, %c0_i32 : i32, i32
  }
  func.func @transform_1(%arg0: i32) -> (i32, i32) {
    %c0_i32 = arith.constant 0 : i32
    %c0_i32_0 = arith.constant 0 : i32
    %c0_i32_1 = arith.constant 0 : i32
    return %c0_i32, %c0_i32_0 : i32, i32
  }
  func.func @transform_2(%arg0: i32) -> (i32, i32) {
    %c0_i32 = arith.constant 0 : i32
    %c0_i32_0 = arith.constant 0 : i32
    %c0_i32_1 = arith.constant 0 : i32
    return %c0_i32, %c0_i32_0 : i32, i32
  }
  func.func @transform_3(%arg0: i32) -> (i32, i32) {
    %c0_i32 = arith.constant 0 : i32
    %c0_i32_0 = arith.constant 0 : i32
    %c0_i32_1 = arith.constant 0 : i32
    return %c0_i32, %c0_i32_0 : i32, i32
  }
  func.func @transform_4(%arg0: i32) -> (i32, i32) {
    %c0_i32 = arith.constant 0 : i32
    %c0_i32_0 = arith.constant 0 : i32
    %c0_i32_1 = arith.constant 0 : i32
    return %c0_i32, %c0_i32_0 : i32, i32
  }
  func.func @transform_5(%arg0: i32) -> (i32, i32) {
    %c0_i32 = arith.constant 0 : i32
    %c0_i32_0 = arith.constant 0 : i32
    %c0_i32_1 = arith.constant 0 : i32
    return %c0_i32, %c0_i32_0 : i32, i32
  }
  func.func @transform_6(%arg0: i32) -> (i32, i32) {
    %c0_i32 = arith.constant 0 : i32
    %c0_i32_0 = arith.constant 0 : i32
    %c0_i32_1 = arith.constant 0 : i32
    return %c0_i32, %c0_i32_0 : i32, i32
  }
  func.func @transform_7(%arg0: i32) -> (i32, i32) {
    %c0_i32 = arith.constant 0 : i32
    %c0_i32_0 = arith.constant 0 : i32
    return %arg0, %c0_i32 : i32, i32
  }
}

</mosaic_0001>

<bundles_post_ra>
// kernel: network_forward.1
= control target key start
LH: loop header
LB: loop body
LE: loop exit
PB: predicated region body
PF: predicated region fallthrough
CT: control target
= control target key end

     0   :  { %12 = vsyncpa [#allocation3], 0  ;;  %s447_s24 = smov [#allocation2]   ;;  %s571_s0 = inlined_call_operand.vmem [shape: f32[8,24], index: 0, kind: input, shape index: {}]   ;;  %s572_s1 = inlined_call_operand.hbm [shape: f32[24,64], index: 1, kind: input, shape index: {}]   ;;  %s573_s2 = inlined_call_operand.vmem [shape: f32[1,64], index: 2, kind: input, shape index: {}]   ;;  %s574_s3 = inlined_call_operand.vmem [shape: f32[64,64], index: 3, kind: input, shape index: {}]   ;;  %s575_s4 = inlined_call_operand.vmem [shape: f32[1,64], index: 4, kind: input, shape index: {}]   ;;  %s576_s5 = inlined_call_operand.vmem [shape: f32[64,4], index: 5, kind: input, shape index: {}]   ;;  %s577_s6 = inlined_call_operand.vmem [shape: f32[1,4], index: 6, kind: input, shape index: {}]   ;;  %s578_s7 = inlined_call_operand.vmem [shape: f32[8,4], index: 7, kind: output, shape index: {}]  }
   0x1   :  { %s20_s25 = sshll.u32 %s447_s24, 4  ;;  %s423_s28 = scalar_lea.hbm %s572_s1, 384  ;;  %s21_s25 = int_to_ptr.vmem [resolvable:$true] %s20_s25 }
   0x2   :  { %p424_p0 = scmp.ne.s32.totalorder %s572_s1, %s423_s28  ;;  %p427_p1 = scmp.lt.u32.totalorder %s423_s28, %s572_s1 }
   0x4   :  { %p429_p2 = pnand %p427_p1, %p424_p0 }
   0x6   :  { %432 = shalt.err (!%p429_p2)
}
   0x7   :  { %s433_s10 = scalar_lea.vmem %s21_s25, 384  ;;  %p438_p4 = scmp.lt.s32.totalorder %s21_s25, %s21_s25 }
   0x8   :  { %p434_p3 = scmp.ne.s32.totalorder %s21_s25, %s433_s10  ;;  %p439_p5 = scmp.lt.s32.totalorder %s433_s10, %s433_s10 }
   0xa   :  { %p440_p6 = por %p439_p5, %p438_p4 }
   0xc   :  { %p441_p7 = pnand %p440_p6, %p434_p3 }
   0xe   :  { %444 = shalt.err (!%p441_p7)
}
   0xf   :  { %s448_s11 = smov 128   ;;  %s449_s12 = smov 8  }
  0x10   :  { %26 = dma.hbm_to_vmem [thread:$0]  %s572_s1, 384, %s21_s25, [#allocation3], %s448_s11, %s448_s11, %s449_s12  }
  0x11   :  { %445 = dma.done.wait [#allocation3], 384  }
  0x12   :  { %446 = vsyncadd [#allocation3], 4294966912  ;;  %v450_v0 = vmov 0.0|0.0   ;;  %vm451_vm0 = vmmov 0   ;;  %v452_v1 = vmov 0.0   ;;  %v41_v2 = vld [vmem:[#allocation2] sm:$0xff] }
  0x13   :  { %390 = vmatprep.subr.bf16.mxu0 %v450_v0  ;;  %349 = vmatprep.mubr.msk.f32.mxu0 %vm451_vm0, %v452_v1  ;;  %v42_v3 = vld [vmem:[#allocation2 + $0x8] sm:$0xff]  ;;  %v128_v5 = vld [vmem:[%s574_s3] sm:$0xff]  ;;  %v130_v8 = vld [vmem:[%s574_s3 + $0x10] sm:$0xff]  ;;  %vm51_vm1 = vcmask 195584   ;;  %vm143_vm3 = vcmask 523264   ;;  %vm308_vm5 = vcmask 31744  }
  0x14   :  { %393 = vmatprep.subr.bf16.mxu1 %v450_v0  ;;  %368 = vmatprep.mubr.msk.f32.mxu1 %vm451_vm0, %v452_v1  ;;  %v391_v4 = vpack.c.bf16 %v42_v3, %v41_v2  ;;  %v129_v6 = vld [vmem:[%s574_s3 + $0x8] sm:$0xff]  ;;  %v131_v9 = vld [vmem:[%s574_s3 + $0x18] sm:$0xff]  ;;  %v43_v10 = vld [vmem:[#allocation2 + $0x10] sm:$0xff] }
  0x15   :  { %v394_v7 = vpack.c.bf16 %v129_v6, %v128_v5  ;;  %v397_v11 = vpack.c.bf16 %v131_v9, %v130_v8  ;;  %v40_v12 = vld [vmem:[%s571_s0] sm:$0xff]  ;;  %v133_v14 = vld [vmem:[%s574_s3 + $0x28] sm:$0xff]  ;;  %v134_v16 = vld [vmem:[%s574_s3 + $0x30] sm:$0xff] }
  0x16   :  { %392 = vmatpush3.bf16.msra.mxu0 %v391_v4  ;;  %v132_v13 = vld [vmem:[%s574_s3 + $0x20] sm:$0xff]  ;;  %v135_v17 = vld [vmem:[%s574_s3 + $0x38] sm:$0xff]  ;;  %v221_v20 = vld [vmem:[%s576_s5 + $0x8] sm:$0xff] }
  0x17   :  { %347 = vmatprep.subr.mxu0 %v452_v1  ;;  %395 = vmatpush3.bf16.msra.mxu1 %v394_v7  ;;  %v400_v15 = vpack.c.bf16 %v133_v14, %v132_v13  ;;  %v403_v18 = vpack.c.bf16 %v135_v17, %v134_v16  ;;  %v220_v19 = vld [vmem:[%s576_s5] sm:$0xff]  ;;  %v222_v21 = vld [vmem:[%s576_s5 + $0x10] sm:$0xff]  ;;  %v223_v23 = vld [vmem:[%s576_s5 + $0x18] sm:$0xff] }
  0x18   :  { %396 = vmatprep.subr.bf16.mxu1 %v450_v0  ;;  %v406_v22 = vpack.c.bf16 %v221_v20, %v220_v19  ;;  %v409_v24 = vpack.c.bf16 %v223_v23, %v222_v21  ;;  %v224_v25 = vld [vmem:[%s576_s5 + $0x20] sm:$0xff]  ;;  %v225_v26 = vld [vmem:[%s576_s5 + $0x28] sm:$0xff]  ;;  %v226_v34 = vld [vmem:[%s576_s5 + $0x30] sm:$0xff] }
  0x19   :  { %v412_v27 = vpack.c.bf16 %v225_v26, %v224_v25  ;;  %v315_v28 = vld [vmem:[%s573_s2] ss:$0 sm:$0xff]  ;;  %v227_v35 = vld [vmem:[%s576_s5 + $0x38] sm:$0xff] }
  0x1a   :  { %348 = vmatpush3.msra.mxu0 %v43_v10  ;;  %v415_v36 = vpack.c.bf16 %v227_v35, %v226_v34  ;;  %v317_v37 = vld [vmem:[%s575_s4] ss:$0 sm:$0xff] }
  0x1b   :  { %350 = vmatmul.mubr.msk.f32.vlgmr.msra.gmra.mrb[0].mxu0 %vm51_vm1, %v40_v12  ;;  %398 = vmatpush3.bf16.msra.mxu1 %v397_v11  ;;  %v319_v43 = vld [vmem:[%s577_s6] ss:$0 sm:$0xff] }
  0x1c   :  { %399 = vmatprep.subr.bf16.mxu1 %v450_v0  ;;  %405 = vmatprep.subr.bf16.mxu0 %v450_v0 }
  0x1d   :  { %387 = vmatprep.mubr.msk.f32.mxu0 %vm451_vm0, %v452_v1  ;;  %407 = vmatpush3.bf16.msra.mxu0 %v406_v22 }
  0x1e   :  { %408 = vmatprep.subr.bf16.mxu0 %v450_v0 }
  0x1f   :  { %401 = vmatpush3.bf16.msra.mxu1 %v400_v15 }
  0x20   :  { %402 = vmatprep.subr.bf16.mxu1 %v450_v0 }
  0x21   :  { %410 = vmatpush3.bf16.msra.mxu0 %v409_v24 }
  0x22   :  { %411 = vmatprep.subr.bf16.mxu0 %v450_v0 }
  0x23   :  { %404 = vmatpush3.bf16.msra.mxu1 %v403_v18 }
  0x25   :  { %413 = vmatpush3.bf16.msra.mxu0 %v412_v27 }
  0x26   :  { %414 = vmatprep.subr.bf16.mxu0 %v450_v0 }
  0x29   :  { %416 = vmatpush3.bf16.msra.mxu0 %v415_v36 }
  0xee   :  { %v121_v29 = vpop.f32.mrb[0].mxu0 }
  0xef   :  { %v122_v30 = vadd.f32 %v315_v28, %v121_v29  ;;  %v351_v31 = vpop.f32.mrb[1].mxu0 }
  0xf1   :  { %vm125_vm2 = vcmp.gt.f32.partialorder %v122_v30, 0.0  ;;  %v126_v32 = vmul.f32 0.01, %v122_v30 }
  0xf3   :  { %v127_v33 = vsel %vm125_vm2, %v122_v30, %v126_v32 }
  0xf4   :  { %369 = vmatmul.mubr.msk.f32.vlgmr.msra.gmra.mrb[0].mxu1 %vm143_vm3, %v127_v33 }
 0x1c7   :  { %v213_v38 = vpop.f32.mrb[0].mxu1 }
 0x1c8   :  { %v214_v39 = vadd.f32 %v317_v37, %v213_v38  ;;  %v370_v40 = vpop.f32.mrb[1].mxu1 }
 0x1ca   :  { %vm217_vm4 = vcmp.gt.f32.partialorder %v214_v39, 0.0  ;;  %v218_v41 = vmul.f32 0.01, %v214_v39 }
 0x1cc   :  { %v219_v42 = vsel %vm217_vm4, %v214_v39, %v218_v41 }
 0x1cd   :  { %388 = vmatmul.mubr.msk.f32.vlgmr.msra.gmra.mrb[2].mxu0 %vm143_vm3, %v219_v42 }
 0x2a0   :  { %v304_v44 = vpop.f32.mrb[2].mxu0 }
 0x2a1   :  { %v305_v45 = vadd.f32 %v319_v43, %v304_v44  ;;  %v389_v46 = vpop.f32.mrb[3].mxu0 }
 0x2a3   :  { %309 = vst.msk [vmem:[%s578_s7] sm:$0xff] %vm308_vm5, %v305_v45 }
 0x2a4   :  { %314 = vsyncpa [#allocation3], 1 }

</bundles_post_ra>
